<compile_context>
chip_gen: v7x
topology: tpu7x:2x2x1
jax: 0.10.0
libtpu: 0.0.40
codegen_flags: <defaults>
</compile_context>

<pallas_src>
import functools

import jax
import jax.numpy as jnp
from jax.experimental import pallas as pl
from jax.experimental.pallas import tpu as pltpu

_LANE = 128            # lane width (last dim of every block)
_VREG_ELEMS = 8 * _LANE


def _ceil_div(a, b):
    return -(-a // b)


def _max_row_tile():
    """Max sublanes per block: 1024 (512 KiB f32) by default, 2048 on v7x."""
    try:
        kind = jax.devices()[0].device_kind.lower()
        if "v7" in kind or "7x" in kind:
            return 2048
    except Exception:
        pass
    return 1024


def _pow_gamma(q, gamma):
    """(q)**gamma, specialized to repeated multiplies for integer gamma."""
    g = float(gamma)
    if g == round(g) and 0.0 <= g <= 16.0:
        k = int(round(g))
        if k == 0:
            return jnp.ones_like(q)
        result, base = None, q
        while k:
            if k & 1:
                result = base if result is None else result * base
            k >>= 1
            if k:
                base = base * base
        return result
    return q ** g   # non-integer gamma: float pow (log+exp on EUP)


def _focal_terms_from_z(z, alpha, gamma):
    """Focal term with the label folded in: z = x (label 1) or -x (label 0).

    bce = softplus(-z) = max(-z, 0) + log1p(exp(-|z|))   (matches the stable
          BCE-with-logits formula of the reference bit-for-bit)
    1-pt = sigmoid(-z) = where(z >= 0, e, 1) / (1 + e)   with e = exp(-|z|)
          (reuses e instead of a second exp(-bce)).
    """
    e = jnp.exp(-jnp.abs(z))
    bce = jnp.maximum(-z, 0.0) + jnp.log1p(e)
    inv = 1.0 / (1.0 + e)                       # exact divide (EUP, no 2nd exp)
    q = jnp.where(z >= 0, e, 1.0) * inv         # q = 1 - pt, no cancellation
    return alpha * _pow_gamma(q, gamma) * bce


# ---------------------------------------------------------------------------
# Reduction ('mean' / 'sum') kernel.
# Grid: (2 cores [parallel], blocks_per_core [arbitrary]); global block index
# b = c*blocks_per_core + i covers [pos blocks | neg blocks | padding].
# The (8,128) output block indexed by c is the per-core accumulator.
# ---------------------------------------------------------------------------
def _focal_sum_kernel(xp_ref, xn_ref, o_ref, *, alpha, gamma,
                      pos_blocks, neg_blocks, blocks_per_core,
                      pos_tail_valid, neg_tail_valid):
    c = pl.program_id(0)
    i = pl.program_id(1)
    b = c * blocks_per_core + i

    @pl.when(i == 0)
    def _init():
        o_ref[...] = jnp.zeros_like(o_ref)

    def segment(x_ref, positive, seg_start, seg_blocks, tail_valid):
        rt = x_ref.shape[0]
        block_elems = rt * _LANE
        in_seg = jnp.logical_and(b >= seg_start, b < seg_start + seg_blocks)

        @pl.when(in_seg)
        def _active():
            x = x_ref[...].astype(jnp.float32)
            z = x if positive else -x
            fl = _focal_terms_from_z(z, alpha, gamma)

            if tail_valid >= block_elems:
                # Segment is an exact multiple of the block: never any mask.
                o_ref[...] += fl.reshape(-1, 8, _LANE).sum(axis=0)
            else:
                is_tail = b == seg_start + seg_blocks - 1

                @pl.when(jnp.logical_not(is_tail))
                def _interior():
                    o_ref[...] += fl.reshape(-1, 8, _LANE).sum(axis=0)

                @pl.when(is_tail)
                def _tail():
                    # Mask out zero-padding and Pallas ragged-block garbage.
                    row_i = jax.lax.broadcasted_iota(jnp.int32, (rt, _LANE), 0)
                    lane_i = jax.lax.broadcasted_iota(jnp.int32, (rt, _LANE), 1)
                    idx = row_i * _LANE + lane_i
                    # where-select (not multiply): NaN/Inf garbage stays out.
                    flm = jnp.where(idx < tail_valid, fl, jnp.float32(0.0))
                    o_ref[...] += flm.reshape(-1, 8, _LANE).sum(axis=0)

    segment(xp_ref, True, 0, pos_blocks, pos_tail_valid)
    segment(xn_ref, False, pos_blocks, neg_blocks, neg_tail_valid)


# ---------------------------------------------------------------------------
# Elementwise ('none') kernel: one stream, label baked in, no mask needed
# (padding / ragged rows are sliced away in the wrapper).
# ---------------------------------------------------------------------------
def _focal_elem_kernel(x_ref, o_ref, *, alpha, gamma, positive):
    x = x_ref[...].astype(jnp.float32)
    z = x if positive else -x
    o_ref[...] = _focal_terms_from_z(z, alpha, gamma)


def _elementwise_focal(x2, n, rt, positive, alpha, gamma, vmem_limit):
    rows = x2.shape[0]
    blocks = _ceil_div(rows, rt)
    spec = pl.BlockSpec((rt, _LANE), lambda i: (i, 0))
    out = pl.pallas_call(
        functools.partial(_focal_elem_kernel, alpha=alpha, gamma=gamma,
                          positive=positive),
        out_shape=jax.ShapeDtypeStruct((rows, _LANE), jnp.float32),
        grid_spec=pltpu.PrefetchScalarGridSpec(
            num_scalar_prefetch=0,
            grid=(blocks,),
            in_specs=[spec],
            out_specs=spec,
        ),
        compiler_params=pltpu.CompilerParams(
            dimension_semantics=("parallel",),
            vmem_limit_bytes=vmem_limit),
    )(x2)
    return out.reshape(-1)[:n]


# ---------------------------------------------------------------------------
# Wrapper
# ---------------------------------------------------------------------------
def focal_loss(pos_out, neg_out, pos_weight=None, *, alpha=0.2, gamma=2.0,
               reduction="mean", row_tile=None):
    """Pallas equivalent of FocalLoss(alpha, gamma, reduction)(pos_out, neg_out)."""
    del pos_weight  # unused by the reference forward pass
    alpha = float(alpha)
    gamma = float(gamma)

    def prep(x):
        x = jnp.asarray(x)
        if not jnp.issubdtype(x.dtype, jnp.floating):
            x = x.astype(jnp.float32)
        x = x.reshape(-1)
        n = int(x.shape[0])
        if n == 0:
            return jnp.zeros((8, _LANE), jnp.float32), 0
        pad = (-n) % _VREG_ELEMS
        if pad:  # pad only to the next 8x128 boundary (no full-block pad)
            x = jnp.pad(x, (0, pad))
        return x.reshape(-1, _LANE), n

    xp, n_pos = prep(pos_out)
    xn, n_neg = prep(neg_out)
    n = n_pos + n_neg

    if row_tile is not None:
        max_rt = max(8, (int(row_tile) // 8) * 8)
    else:
        max_rt = _max_row_tile()

    rt_pos = min(max_rt, xp.shape[0])   # both multiples of 8, rt <= rows
    rt_neg = min(max_rt, xn.shape[0])

    bytes_per_step = (rt_pos * _LANE * xp.dtype.itemsize
                      + rt_neg * _LANE * xn.dtype.itemsize
                      + max(rt_pos, rt_neg) * _LANE * 4)
    vmem_limit = int(min(100 * 2**20, max(16 * 2**20, 8 * bytes_per_step)))

    if reduction not in ("mean", "sum"):
        # 'none': per-element focal loss in concat order [pos, neg].
        parts = []
        if n_pos > 0:
            parts.append(_elementwise_focal(xp, n_pos, rt_pos, True,
                                            alpha, gamma, vmem_limit))
        if n_neg > 0:
            parts.append(_elementwise_focal(xn, n_neg, rt_neg, False,
                                            alpha, gamma, vmem_limit))
        if not parts:
            return jnp.zeros((0,), jnp.float32)
        return parts[0] if len(parts) == 1 else jnp.concatenate(parts)

    # ---- reduction path ----
    pos_blocks = _ceil_div(xp.shape[0], rt_pos)
    neg_blocks = _ceil_div(xn.shape[0], rt_neg)
    # Real (unpadded) elements inside the final block of each segment.
    pos_tail_valid = n_pos - (pos_blocks - 1) * rt_pos * _LANE
    neg_tail_valid = n_neg - (neg_blocks - 1) * rt_neg * _LANE

    total_blocks = pos_blocks + neg_blocks        # >= 2 (dummy block if empty)
    ncores = 2                                    # megacore split; harmless on 1-TC chips
    bpc = _ceil_div(total_blocks, ncores)

    pos_spec = pl.BlockSpec(
        (rt_pos, _LANE),
        lambda c, i: (jnp.minimum(c * bpc + i, pos_blocks - 1), 0))
    neg_spec = pl.BlockSpec(
        (rt_neg, _LANE),
        lambda c, i: (jnp.clip(c * bpc + i - pos_blocks, 0, neg_blocks - 1), 0))
    out_spec = pl.BlockSpec((8, _LANE), lambda c, i: (c, 0))

    partials = pl.pallas_call(
        functools.partial(_focal_sum_kernel,
                          alpha=alpha, gamma=gamma,
                          pos_blocks=pos_blocks, neg_blocks=neg_blocks,
                          blocks_per_core=bpc,
                          pos_tail_valid=pos_tail_valid,
                          neg_tail_valid=neg_tail_valid),
        out_shape=jax.ShapeDtypeStruct((ncores * 8, _LANE), jnp.float32),
        grid_spec=pltpu.PrefetchScalarGridSpec(
            num_scalar_prefetch=0,
            grid=(ncores, bpc),
            in_specs=[pos_spec, neg_spec],
            out_specs=out_spec,
        ),
        compiler_params=pltpu.CompilerParams(
            dimension_semantics=("parallel", "arbitrary"),
            vmem_limit_bytes=vmem_limit),
    )(xp, xn)

    total = jnp.sum(partials)
    if reduction == "mean":
        return total / jnp.float32(max(n, 1))
    return total


# ---------------------------------------------------------------------------
# Pure-JAX reference (matches the PyTorch module's forward)
# ---------------------------------------------------------------------------
def _reference(pos_out, neg_out, alpha=0.2, gamma=2.0, reduction="mean"):
    x = jnp.concatenate([pos_out.reshape(-1), neg_out.reshape(-1)])
    y = jnp.concatenate([jnp.ones_like(pos_out).reshape(-1),
                         jnp.zeros_like(neg_out).reshape(-1)])
    bce = jnp.maximum(x, 0.0) - x * y + jnp.log1p(jnp.exp(-jnp.abs(x)))
    pt = jnp.exp(-bce)
    fl = alpha * (1.0 - pt) ** gamma * bce
    if reduction == "mean":
        return jnp.mean(fl)
    if reduction == "sum":
        return jnp.sum(fl)
    return fl


if __name__ == "__main__":
    key = jax.random.PRNGKey(0)
    k1, k2, k3, k4, k5, k6 = jax.random.split(key, 6)

    # Case 1: small, non-lane-aligned sizes (tail masks + pos->neg transition,
    # megacore grid (2, 1)).
    pos_out = jax.random.normal(k1, (130,), jnp.float32)
    neg_out = jax.random.normal(k2, (250,), jnp.float32)

    loss = jax.block_until_ready(
        focal_loss(pos_out, neg_out, alpha=0.2, gamma=2.0, reduction="mean"))
    ref = _reference(pos_out, neg_out, reduction="mean")
    assert jnp.allclose(loss, ref, rtol=1e-5, atol=1e-6), (loss, ref)

    loss_sum = jax.block_until_ready(
        focal_loss(pos_out, neg_out, reduction="sum"))
    ref_sum = _reference(pos_out, neg_out, reduction="sum")
    assert jnp.allclose(loss_sum, ref_sum, rtol=1e-5, atol=1e-5), (loss_sum, ref_sum)

    loss_none = jax.block_until_ready(
        focal_loss(pos_out, neg_out, reduction="none"))
    ref_none = _reference(pos_out, neg_out, reduction="none")
    assert loss_none.shape == ref_none.shape
    assert jnp.allclose(loss_none, ref_none, rtol=1e-5, atol=1e-6)

    # Case 2: small forced row tile -> multi-block neg segment + ragged tail.
    pos2 = jax.random.normal(k3, (700,), jnp.float32)
    neg2 = jax.random.normal(k4, (1200,), jnp.float32)
    loss2 = jax.block_until_ready(
        focal_loss(pos2, neg2, reduction="mean", row_tile=8))
    ref2 = _reference(pos2, neg2, reduction="mean")
    assert jnp.allclose(loss2, ref2, rtol=1e-5, atol=1e-6), (loss2, ref2)

    # Case 3: exactly vreg-aligned sizes -> no pad, no mask anywhere.
    pos3 = jax.random.normal(k5, (2048,), jnp.float32)
    neg3 = jax.random.normal(k6, (3072,), jnp.float32)
    loss3 = jax.block_until_ready(focal_loss(pos3, neg3, reduction="mean"))
    ref3 = _reference(pos3, neg3, reduction="mean")
    assert jnp.allclose(loss3, ref3, rtol=1e-5, atol=1e-6), (loss3, ref3)

    # Case 4: moderately larger, unaligned sizes -> bigger row tiles,
    # large-block vreg accumulation and tail masking.
    pos4 = jax.random.normal(k1, (33000,), jnp.float32)
    neg4 = jax.random.normal(k2, (50000,), jnp.float32)
    loss4 = jax.block_until_ready(focal_loss(pos4, neg4, reduction="mean"))
    ref4 = _reference(pos4, neg4, reduction="mean")
    assert jnp.allclose(loss4, ref4, rtol=2e-5, atol=1e-6), (loss4, ref4)

    # Case 5: bf16 logits streamed directly into the kernel (upcast in-kernel).
    pos5 = jax.random.normal(k3, (130,), jnp.float32).astype(jnp.bfloat16)
    neg5 = jax.random.normal(k4, (250,), jnp.float32).astype(jnp.bfloat16)
    loss5 = jax.block_until_ready(focal_loss(pos5, neg5, reduction="mean"))
    ref5 = _reference(pos5.astype(jnp.float32), neg5.astype(jnp.float32),
                      reduction="mean")
    assert jnp.allclose(loss5, ref5, rtol=1e-5, atol=1e-6), (loss5, ref5)

    print("KERNEL_OK")
</pallas_src>

<mosaic_0001>
module attributes {stable_mosaic.version = 11 : i64} {
  func.func @_focal_sum_kernel(%arg0: i32, %arg1: i32, %arg2: memref<8x128xf32, #tpu.memory_space<vmem>>, %arg3: memref<8x128xf32, #tpu.memory_space<vmem>>, %arg4: memref<8x128xf32, #tpu.memory_space<vmem>>) attributes {dimension_semantics = [#tpu.dimension_semantics<parallel>, #tpu.dimension_semantics<arbitrary>], iteration_bounds = array<i64: 2, 1>, scalar_prefetch = 0 : i64, scratch_operands = 0 : i64, tpu.core_type = #tpu.core_type<tc>, window_params = [{transform_indices = @transform_0, window_bounds = array<i64: 8, 128>}, {transform_indices = @transform_1, window_bounds = array<i64: 8, 128>}, {transform_indices = @transform_2, window_bounds = array<i64: 8, 128>}]} {
    %c1_i32 = arith.constant 1 : i32
    %0 = arith.muli %arg0, %c1_i32 : i32
    %1 = arith.addi %0, %arg1 : i32
    %c0_i32 = arith.constant 0 : i32
    %2 = arith.cmpi eq, %arg1, %c0_i32 : i32
    %3 = arith.extui %2 : i1 to i32
    %c0_i32_0 = arith.constant 0 : i32
    %4 = arith.cmpi ne, %3, %c0_i32_0 : i32
    scf.if %4 {
      %cst = arith.constant 0.000000e+00 : f32
      %15 = vector.broadcast %cst : f32 to vector<8x128xf32>
      %c0 = arith.constant 0 : index
      %c0_6 = arith.constant 0 : index
      %16 = vector.load %arg4[%c0, %c0_6] : memref<8x128xf32, #tpu.memory_space<vmem>>, vector<8x128xf32>
      tpu.vector_store %arg4[%c0, %c0_6], %15 {strides = array<i32>} : memref<8x128xf32, #tpu.memory_space<vmem>>, vector<8x128xf32>,
    } else {
    }
    %c0_i32_1 = arith.constant 0 : i32
    %5 = arith.cmpi sge, %1, %c0_i32_1 : i32
    %c1_i32_2 = arith.constant 1 : i32
    %6 = arith.cmpi slt, %1, %c1_i32_2 : i32
    %7 = arith.andi %5, %6 : i1
    %8 = arith.extui %7 : i1 to i32
    %c0_i32_3 = arith.constant 0 : i32
    %9 = arith.cmpi ne, %8, %c0_i32_3 : i32
    scf.if %9 {
      %c0 = arith.constant 0 : index
      %c0_6 = arith.constant 0 : index
      %15 = vector.load %arg2[%c0, %c0_6] : memref<8x128xf32, #tpu.memory_space<vmem>>, vector<8x128xf32>
      %16 = math.absf %15 : vector<8x128xf32>
      %cst = arith.constant 0.000000e+00 : f32
      %17 = vector.broadcast %cst : f32 to vector<8x128xf32>
      %18 = arith.subf %17, %16 : vector<8x128xf32>
      %19 = math.exp %18 : vector<8x128xf32>
      %cst_7 = arith.constant 0.000000e+00 : f32
      %20 = vector.broadcast %cst_7 : f32 to vector<8x128xf32>
      %21 = arith.subf %20, %15 : vector<8x128xf32>
      %cst_8 = arith.constant 0.000000e+00 : f32
      %22 = vector.broadcast %cst_8 : f32 to vector<8x128xf32>
      %23 = arith.maximumf %21, %22 : vector<8x128xf32>
      %24 = math.log1p %19 : vector<8x128xf32>
      %25 = arith.addf %23, %24 : vector<8x128xf32>
      %cst_9 = arith.constant 1.000000e+00 : f32
      %26 = vector.broadcast %cst_9 : f32 to vector<8x128xf32>
      %27 = arith.addf %26, %19 : vector<8x128xf32>
      %cst_10 = arith.constant 1.000000e+00 : f32
      %28 = vector.broadcast %cst_10 : f32 to vector<8x128xf32>
      %29 = arith.divf %28, %27 : vector<8x128xf32>
      %cst_11 = arith.constant 0.000000e+00 : f32
      %30 = vector.broadcast %cst_11 : f32 to vector<8x128xf32>
      %31 = arith.cmpf oge, %15, %30 : vector<8x128xf32>
      %cst_12 = arith.constant 1.000000e+00 : f32
      %32 = vector.broadcast %cst_12 : f32 to vector<8x128xf32>
      %33 = arith.select %31, %19, %32 : vector<8x128xi1>, vector<8x128xf32>
      %34 = arith.mulf %33, %29 : vector<8x128xf32>
      %35 = arith.mulf %34, %34 : vector<8x128xf32>
      %cst_13 = arith.constant 2.000000e-01 : f32
      %36 = vector.broadcast %cst_13 : f32 to vector<8x128xf32>
      %37 = arith.mulf %36, %35 : vector<8x128xf32>
      %38 = arith.mulf %37, %25 : vector<8x128xf32>
      %c0_i32_14 = arith.constant 0 : i32
      %39 = arith.cmpi eq, %1, %c0_i32_14 : i32
      %true = arith.constant true
      %40 = arith.xori %39, %true : i1
      %41 = arith.extui %40 : i1 to i32
      %c0_i32_15 = arith.constant 0 : i32
      %42 = arith.cmpi ne, %41, %c0_i32_15 : i32
      scf.if %42 {
        %c0_17 = arith.constant 0 : index
        %c0_18 = arith.constant 0 : index
        %45 = vector.load %arg4[%c0_17, %c0_18] : memref<8x128xf32, #tpu.memory_space<vmem>>, vector<8x128xf32>
        %46 = vector.shape_cast %38 : vector<8x128xf32> to vector<1x8x128xf32>
        %cst_19 = arith.constant dense<0.000000e+00> : vector<8x128xf32>
        %47 = vector.multi_reduction <add>, %46, %cst_19 [0] : vector<1x8x128xf32> to vector<8x128xf32>
        %48 = arith.addf %45, %47 : vector<8x128xf32>
        %c0_20 = arith.constant 0 : index
        %c0_21 = arith.constant 0 : index
        %49 = vector.load %arg4[%c0_20, %c0_21] : memref<8x128xf32, #tpu.memory_space<vmem>>, vector<8x128xf32>
        tpu.vector_store %arg4[%c0_20, %c0_21], %48 {strides = array<i32>} : memref<8x128xf32, #tpu.memory_space<vmem>>, vector<8x128xf32>,
      } else {
      }
      %43 = arith.extui %39 : i1 to i32
      %c0_i32_16 = arith.constant 0 : i32
      %44 = arith.cmpi ne, %43, %c0_i32_16 : i32
      scf.if %44 {
        %45 = tpu.iota {dimensions = array<i32: 0>} : vector<8x128xi32>
        %46 = tpu.iota {dimensions = array<i32: 1>} : vector<8x128xi32>
        %c128_i32 = arith.constant 128 : i32
        %47 = vector.broadcast %c128_i32 : i32 to vector<8x128xi32>
        %48 = arith.muli %45, %47 : vector<8x128xi32>
        %49 = arith.addi %48, %46 : vector<8x128xi32>
        %c130_i32 = arith.constant 130 : i32
        %50 = vector.broadcast %c130_i32 : i32 to vector<8x128xi32>
        %51 = arith.cmpi slt, %49, %50 : vector<8x128xi32>
        %cst_17 = arith.constant 0.000000e+00 : f32
        %52 = vector.broadcast %cst_17 : f32 to vector<8x128xf32>
        %53 = arith.select %51, %38, %52 : vector<8x128xi1>, vector<8x128xf32>
        %c0_18 = arith.constant 0 : index
        %c0_19 = arith.constant 0 : index
        %54 = vector.load %arg4[%c0_18, %c0_19] : memref<8x128xf32, #tpu.memory_space<vmem>>, vector<8x128xf32>
        %55 = vector.shape_cast %53 : vector<8x128xf32> to vector<1x8x128xf32>
        %cst_20 = arith.constant dense<0.000000e+00> : vector<8x128xf32>
        %56 = vector.multi_reduction <add>, %55, %cst_20 [0] : vector<1x8x128xf32> to vector<8x128xf32>
        %57 = arith.addf %54, %56 : vector<8x128xf32>
        %c0_21 = arith.constant 0 : index
        %c0_22 = arith.constant 0 : index
        %58 = vector.load %arg4[%c0_21, %c0_22] : memref<8x128xf32, #tpu.memory_space<vmem>>, vector<8x128xf32>
        tpu.vector_store %arg4[%c0_21, %c0_22], %57 {strides = array<i32>} : memref<8x128xf32, #tpu.memory_space<vmem>>, vector<8x128xf32>,
      } else {
      }
    } else {
    }
    %c1_i32_4 = arith.constant 1 : i32
    %10 = arith.cmpi sge, %1, %c1_i32_4 : i32
    %c2_i32 = arith.constant 2 : i32
    %11 = arith.cmpi slt, %1, %c2_i32 : i32
    %12 = arith.andi %10, %11 : i1
    %13 = arith.extui %12 : i1 to i32
    %c0_i32_5 = arith.constant 0 : i32
    %14 = arith.cmpi ne, %13, %c0_i32_5 : i32
    scf.if %14 {
      %c0 = arith.constant 0 : index
      %c0_6 = arith.constant 0 : index
      %15 = vector.load %arg3[%c0, %c0_6] : memref<8x128xf32, #tpu.memory_space<vmem>>, vector<8x128xf32>
      %cst = arith.constant 0.000000e+00 : f32
      %16 = vector.broadcast %cst : f32 to vector<8x128xf32>
      %17 = arith.subf %16, %15 : vector<8x128xf32>
      %18 = math.absf %17 : vector<8x128xf32>
      %cst_7 = arith.constant 0.000000e+00 : f32
      %19 = vector.broadcast %cst_7 : f32 to vector<8x128xf32>
      %20 = arith.subf %19, %18 : vector<8x128xf32>
      %21 = math.exp %20 : vector<8x128xf32>
      %cst_8 = arith.constant 0.000000e+00 : f32
      %22 = vector.broadcast %cst_8 : f32 to vector<8x128xf32>
      %23 = arith.subf %22, %17 : vector<8x128xf32>
      %cst_9 = arith.constant 0.000000e+00 : f32
      %24 = vector.broadcast %cst_9 : f32 to vector<8x128xf32>
      %25 = arith.maximumf %23, %24 : vector<8x128xf32>
      %26 = math.log1p %21 : vector<8x128xf32>
      %27 = arith.addf %25, %26 : vector<8x128xf32>
      %cst_10 = arith.constant 1.000000e+00 : f32
      %28 = vector.broadcast %cst_10 : f32 to vector<8x128xf32>
      %29 = arith.addf %28, %21 : vector<8x128xf32>
      %cst_11 = arith.constant 1.000000e+00 : f32
      %30 = vector.broadcast %cst_11 : f32 to vector<8x128xf32>
      %31 = arith.divf %30, %29 : vector<8x128xf32>
      %cst_12 = arith.constant 0.000000e+00 : f32
      %32 = vector.broadcast %cst_12 : f32 to vector<8x128xf32>
      %33 = arith.cmpf oge, %17, %32 : vector<8x128xf32>
      %cst_13 = arith.constant 1.000000e+00 : f32
      %34 = vector.broadcast %cst_13 : f32 to vector<8x128xf32>
      %35 = arith.select %33, %21, %34 : vector<8x128xi1>, vector<8x128xf32>
      %36 = arith.mulf %35, %31 : vector<8x128xf32>
      %37 = arith.mulf %36, %36 : vector<8x128xf32>
      %cst_14 = arith.constant 2.000000e-01 : f32
      %38 = vector.broadcast %cst_14 : f32 to vector<8x128xf32>
      %39 = arith.mulf %38, %37 : vector<8x128xf32>
      %40 = arith.mulf %39, %27 : vector<8x128xf32>
      %c1_i32_15 = arith.constant 1 : i32
      %41 = arith.cmpi eq, %1, %c1_i32_15 : i32
      %true = arith.constant true
      %42 = arith.xori %41, %true : i1
      %43 = arith.extui %42 : i1 to i32
      %c0_i32_16 = arith.constant 0 : i32
      %44 = arith.cmpi ne, %43, %c0_i32_16 : i32
      scf.if %44 {
        %c0_18 = arith.constant 0 : index
        %c0_19 = arith.constant 0 : index
        %47 = vector.load %arg4[%c0_18, %c0_19] : memref<8x128xf32, #tpu.memory_space<vmem>>, vector<8x128xf32>
        %48 = vector.shape_cast %40 : vector<8x128xf32> to vector<1x8x128xf32>
        %cst_20 = arith.constant dense<0.000000e+00> : vector<8x128xf32>
        %49 = vector.multi_reduction <add>, %48, %cst_20 [0] : vector<1x8x128xf32> to vector<8x128xf32>
        %50 = arith.addf %47, %49 : vector<8x128xf32>
        %c0_21 = arith.constant 0 : index
        %c0_22 = arith.constant 0 : index
        %51 = vector.load %arg4[%c0_21, %c0_22] : memref<8x128xf32, #tpu.memory_space<vmem>>, vector<8x128xf32>
        tpu.vector_store %arg4[%c0_21, %c0_22], %50 {strides = array<i32>} : memref<8x128xf32, #tpu.memory_space<vmem>>, vector<8x128xf32>,
      } else {
      }
      %45 = arith.extui %41 : i1 to i32
      %c0_i32_17 = arith.constant 0 : i32
      %46 = arith.cmpi ne, %45, %c0_i32_17 : i32
      scf.if %46 {
        %47 = tpu.iota {dimensions = array<i32: 0>} : vector<8x128xi32>
        %48 = tpu.iota {dimensions = array<i32: 1>} : vector<8x128xi32>
        %c128_i32 = arith.constant 128 : i32
        %49 = vector.broadcast %c128_i32 : i32 to vector<8x128xi32>
        %50 = arith.muli %47, %49 : vector<8x128xi32>
        %51 = arith.addi %50, %48 : vector<8x128xi32>
        %c250_i32 = arith.constant 250 : i32
        %52 = vector.broadcast %c250_i32 : i32 to vector<8x128xi32>
        %53 = arith.cmpi slt, %51, %52 : vector<8x128xi32>
        %cst_18 = arith.constant 0.000000e+00 : f32
        %54 = vector.broadcast %cst_18 : f32 to vector<8x128xf32>
        %55 = arith.select %53, %40, %54 : vector<8x128xi1>, vector<8x128xf32>
        %c0_19 = arith.constant 0 : index
        %c0_20 = arith.constant 0 : index
        %56 = vector.load %arg4[%c0_19, %c0_20] : memref<8x128xf32, #tpu.memory_space<vmem>>, vector<8x128xf32>
        %57 = vector.shape_cast %55 : vector<8x128xf32> to vector<1x8x128xf32>
        %cst_21 = arith.constant dense<0.000000e+00> : vector<8x128xf32>
        %58 = vector.multi_reduction <add>, %57, %cst_21 [0] : vector<1x8x128xf32> to vector<8x128xf32>
        %59 = arith.addf %56, %58 : vector<8x128xf32>
        %c0_22 = arith.constant 0 : index
        %c0_23 = arith.constant 0 : index
        %60 = vector.load %arg4[%c0_22, %c0_23] : memref<8x128xf32, #tpu.memory_space<vmem>>, vector<8x128xf32>
        tpu.vector_store %arg4[%c0_22, %c0_23], %59 {strides = array<i32>} : memref<8x128xf32, #tpu.memory_space<vmem>>, vector<8x128xf32>,
      } else {
      }
    } else {
    }
    return
  }
  func.func @transform_0(%arg0: i32, %arg1: i32) -> (i32, i32) {
    %c1_i32 = arith.constant 1 : i32
    %0 = arith.muli %arg0, %c1_i32 : i32
    %1 = arith.addi %0, %arg1 : i32
    %c0_i32 = arith.constant 0 : i32
    %2 = arith.minsi %1, %c0_i32 : i32
    %c0_i32_0 = arith.constant 0 : i32
    %c0_i32_1 = arith.constant 0 : i32
    return %2, %c0_i32_0 : i32, i32
  }
  func.func @transform_1(%arg0: i32, %arg1: i32) -> (i32, i32) {
    %c1_i32 = arith.constant 1 : i32
    %0 = arith.muli %arg0, %c1_i32 : i32
    %1 = arith.addi %0, %arg1 : i32
    %c1_i32_0 = arith.constant 1 : i32
    %2 = arith.subi %1, %c1_i32_0 : i32
    %c0_i32 = arith.constant 0 : i32
    %c0_i32_1 = arith.constant 0 : i32
    %3 = arith.maxsi %c0_i32, %2 : i32
    %4 = arith.minsi %c0_i32_1, %3 : i32
    %c0_i32_2 = arith.constant 0 : i32
    %c0_i32_3 = arith.constant 0 : i32
    return %4, %c0_i32_2 : i32, i32
  }
  func.func @transform_2(%arg0: i32, %arg1: i32) -> (i32, i32) {
    %c0_i32 = arith.constant 0 : i32
    %c0_i32_0 = arith.constant 0 : i32
    return %arg0, %c0_i32 : i32, i32
  }
}

</mosaic_0001>

<bundles_post_ra>
// kernel: tpu_custom_call.1
= control target key start
LH: loop header
LB: loop body
LE: loop exit
PB: predicated region body
PF: predicated region fallthrough
CT: control target
= control target key end

     0   :  { %7 = vsyncpa [#allocation3], 0  ;;  %s1034_s0 = inlined_call_operand.hbm [shape: f32[8,128], index: 0, kind: input, shape index: {}]   ;;  %s1035_s1 = inlined_call_operand.hbm [shape: f32[8,128], index: 1, kind: input, shape index: {}]   ;;  %s1036_s2 = inlined_call_operand.hbm [shape: f32[16,128], index: 2, kind: output, shape index: {}]  }
   0x1   :  { %9 = vsyncpa [#allocation3 + $0x1], 0 }
   0x2   :  { %10 = vsyncpa [#allocation6], 0 }
   0x3   :  { %12 = vsyncpa [#allocation6 + $0x1], 0 }
   0x4   :  { %13 = vsyncpa [#allocation4], 0 }
   0x5   :  { %15 = vsyncpa [#allocation4 + $0x1], 0  ;;  %s807_s9 = smov 0   ;;  %s809_s10 = smov 0  }
   0x6   :  { %s811_s11 = smov 0   ;;  %s813_s12 = smov 0  }
   0x7   :  { %s815_s13 = smov 0   ;;  %s817_s14 = smov 0  }
   0x8   :  { %s819_s15 = smov 0   ;;  %s821_s16 = smov 0  }
   0x9 LB: > { %s478_s17 = sadd.s32 4294967295, %s786_s16   ;;  %s479_s18 = sadd.s32 4294967294, %s786_s16   ;;  %s786_s16 = sphi %s821_s16, %s21_s16   ;;  %s782_s15 = sphi %s819_s15, %s1068_s15   ;;  %s778_s14 = sphi %s817_s14, %s1067_s14   ;;  %s774_s13 = sphi %s815_s13, %s1024_s13   ;;  %s770_s12 = sphi %s813_s12, %s1066_s12   ;;  %s766_s11 = sphi %s811_s11, %s1065_s11   ;;  %s762_s10 = sphi %s809_s10, %s1064_s10   ;;  %s758_s9 = sphi %s807_s9, %s1063_s9  }
   0xa   : > { %s33_s19 = sadd.s32 1, %s782_s15  ;;  %p755_p1 = scmp.ne.s32.totalorder %s774_s13, 0 }
   0xb   : > { %p35_p0 = scmp.ge.s32.totalorder %s33_s19, 2  ;;  %p1038_p2 = scmp.eq.s32.totalorder %s786_s16, 0 }
   0xc   : > { %p59_p3 = scmp.ne.s32.totalorder %s774_s13, %s770_s12  ;;  %p859_p5 = scmp.eq.s32.totalorder %s478_s17, 0 }
   0xd   : > { %s1070_s19 = smov (%p35_p0, %s33_s19), 0  ;;  %p855_p4 = por %p755_p1, %p1038_p2 }
   0xe   : > { %s1045_s21 = scalar_select %p859_p5, 1, 0 }
   0xf   : > { %p865_p6 = por %p859_p5, %p59_p3  ;;  %s107_s23 = ssub.s32 %s782_s15, %s1070_s19 }
  0x10   : > { %p108_p7 = scmp.eq.s32.totalorder %s107_s23, 0  ;;  %s110_s24 = sadd.s32 1, %s766_s11 }
  0x11   : > { %s1046_s22 = scalar_select %p865_p6, 1, 0 }
  0x12   : > { %s873_s25 = scalar_select %p108_p7, %s766_s11, %s110_s24  }
  0x13   : > { %p120_p8 = scmp.ne.s32.totalorder %s766_s11, %s762_s10  ;;  %p121_p9 = scmp.eq.s32.totalorder %s478_s17, 1 }
  0x14   : > { %p126_p10 = scmp.ne.s32.totalorder %s762_s10, %s758_s9  ;;  %p127_p11 = scmp.eq.s32.totalorder %s479_s18, 1 }
  0x15   : > { %p879_p12 = por %p121_p9, %p120_p8  ;;  %p1037_p1 = scmp.lt.s32.totalorder %s786_s16, 2 }
  0x16   : > { %p884_p0 = por %p127_p11, %p126_p10  ;;  %s788_s28 = smov [#allocation2]  }
  0x17   : > { %s1047_s26 = scalar_select %p879_p12, 1, 0 }
  0x18   : > { %s1048_s27 = scalar_select %p884_p0, 1, 0 }
  0x19   : > { %s161_s29 = sshll.u32 %s788_s28, 4  ;;  %p893_p3 = pnand %p1037_p1, %p855_p4  ;;  %s162_s29 = int_to_ptr.vmem [resolvable:$true] %s161_s29 }
  0x1a   : > { %s621_s5 = scalar_lea.hbm %s1034_s0, 128 }
  0x1b   : > { %s1049_s30 = scalar_select %p893_p3, 1, 0 }
  0x1c   : > { %p622_p9 = scmp.ne.s32.totalorder %s1034_s0, %s621_s5  ;;  %p623_p10 = pneg %p893_p3 }
  0x1d   : > { %p628_p4 = scmp.lt.u32.totalorder %s621_s5, %s621_s5  ;;  %p630_p1 = scmp.lt.u32.totalorder %s621_s5, %s1034_s0 }
  0x1e   : > { %p624_p11 = pnand %p623_p10, %p622_p9 }
  0x1f   : > { %p631_p2 = por %p630_p1, %p628_p4 }
  0x20   : > { %p625_p13 = pneg %p624_p11 }
  0x22   : > { %p632_p7 = pnand %p631_p2, %p625_p13 }
  0x24   : > { %635 = shalt.err (!%p632_p7)
}
  0x25   : > { %s636_s17 = scalar_lea.vmem %s162_s29, 128  ;;  %s643_s18 = scalar_lea.vmem %s162_s29, 256 }
  0x26   : > { %p637_p8 = scmp.ne.s32.totalorder %s162_s29, %s636_s17  ;;  %p644_p5 = scmp.lt.s32.totalorder %s162_s29, %s162_s29 }
  0x27   : > { %p645_p6 = scmp.lt.s32.totalorder %s643_s18, %s636_s17 }
  0x28   : > { %p639_p0 = pnand %p637_p8, %p623_p10 }
  0x29   : > { %p646_p3 = por %p645_p6, %p644_p5 }
  0x2a   : > { %p640_p12 = pneg %p639_p0 }
  0x2c   : > { %p647_p9 = pnand %p646_p3, %p640_p12 }
  0x2e   : > { %650 = shalt.err (!%p647_p9)
}
  0x2f   : > { %p1050_p11 = scmp.ne.s32.totalorder %s1049_s30, 0  ;;  %p1051_p2 = scmp.lt.s32.totalorder %s786_s16, 3 }
  0x30   : > { %p1052_p13 = scmp.ge.s32.totalorder %s786_s16, 1  ;;  %s789_s28 = smov [#allocation5]  }
  0x31   : > { %525 = dma.hbm_to_vmem [thread:$0]  (!%p1050_p11), %s1034_s0, 128, %s162_s29, [#allocation3]  }
  0x32   : > { %p919_p1 = pnand %p1052_p13, %p1051_p2  ;;  %s185_s3 = sshll.u32 %s789_s28, 4  ;;  %s186_s3 = int_to_ptr.vmem [resolvable:$true] %s185_s3 }
  0x33   : > { %p1054_p5 = scmp.eq.s32.totalorder %s786_s16, 0  ;;  %p1055_p6 = scmp.lt.s32.totalorder %s786_s16, 2 }
  0x34   : > { %s1053_s24 = scalar_select %p919_p1, 1, 0 }
  0x35   : > { %p927_p12 = pnand %p1055_p6, %p1054_p5  ;;  %s651_s29 = scalar_lea.hbm %s1035_s1, 128 }
  0x36   : > { %p652_p0 = scmp.ne.s32.totalorder %s1035_s1, %s651_s29  ;;  %p658_p10 = scmp.lt.u32.totalorder %s651_s29, %s1035_s1 }
  0x37   : > { %p653_p3 = pneg %p927_p12 }
  0x39   : > { %p654_p7 = pnand %p653_p3, %p652_p0 }
  0x3b   : > { %p655_p8 = pneg %p654_p7 }
  0x3d   : > { %p660_p4 = pnand %p658_p10, %p655_p8 }
  0x3f   : > { %663 = shalt.err (!%p660_p4)
}
  0x40   : > { %s664_s17 = scalar_lea.vmem %s186_s3, 128  ;;  %s671_s18 = scalar_lea.vmem %s186_s3, 256 }
  0x41   : > { %p665_p9 = scmp.ne.s32.totalorder %s186_s3, %s664_s17  ;;  %p672_p13 = scmp.lt.s32.totalorder %s186_s3, %s186_s3 }
  0x42   : > { %p673_p5 = scmp.lt.s32.totalorder %s671_s18, %s664_s17 }
  0x43   : > { %p667_p11 = pnand %p665_p9, %p653_p3 }
  0x44   : > { %p674_p6 = por %p673_p5, %p672_p13 }
  0x45   : > { %p668_p2 = pneg %p667_p11 }
  0x47   : > { %p675_p1 = pnand %p674_p6, %p668_p2 }
  0x49   : > { %678 = shalt.err (!%p675_p1)
}
  0x4a   : > { %528 = dma.hbm_to_vmem [thread:$0]  (!%p927_p12), %s1035_s1, 128, %s186_s3, [#allocation6]  }
  0x4b   : > { %p1057_p0 = scmp.ne.s32.totalorder %s1053_s24, 0 }
  0x4c   : > { %s196_s28 = sand.u32 (!%p1057_p0), 1, %s774_s13   ;;  %p1058_p3 = scmp.ne.s32.totalorder (!%p1057_p0), %s1046_s22, 0 }
  0x4d   : > { %194 = sbr.rel (%p1057_p0) target bundleno = 236 (0xec), region = 28  ;;  %s505_s4 = sshll.u32 (!%p1057_p0), %s196_s28, 3 }
  0x4e   : > { %s197_s5 = scalar_lea.sflag (!%p1057_p0), [#allocation3], %s196_s28  ;;  %s200_s29 = scalar_lea.vmem (!%p1057_p0), [#allocation2], %s505_s4 }
  0x54   : > { %744 = dma.done.wait (%p1058_p3), %s197_s5, 128  }
  0x55   : > { %746 = vsyncadd (%p1058_p3), %s197_s5, 4294967168  ;;  %p1059_p1 = scmp.ne.s32.totalorder %s1045_s21, 0 }
  0x57   : > { %748 = dma.done.wait (%p1059_p1), [#allocation6], 128  }
  0x58   : > { %750 = vsyncadd (%p1059_p1), [#allocation6], 4294967168  ;;  %s232_s24 = sand.u32 1, %s762_s10   ;;  %p250_p12 = scmp.ge.s32.totalorder %s778_s14, 0  ;;  %v790_v0 = vmov 0.0  }
  0x59   : > { %s507_s3 = sshll.u32 %s232_s24, 3  ;;  %p251_p7 = scmp.lt.s32.totalorder %s778_s14, 1 }
  0x5a   : > { %s963_s30 = scalar_lea.vmem [#allocation7], %s507_s3 }
  0x5b   : > { %249 = vst [vmem:[%s963_s30] sm:$0xff] %v790_v0  ;;  %p252_p8 = pnand %p251_p7, %p250_p12 }
  0x5c   : > { %v256_v1 = vld [vmem:[%s200_s29] sm:$0xff] (!%p252_p8)  ;;  %p508_p10 = scmp.eq.s32.totalorder (!%p252_p8), %s778_s14, 0 }
  0x5d   : > { %255 = sbr.rel (%p252_p8) target bundleno = 149 (0x95), region = 44  ;;  %v257_v2 = vand.u32 (!%p252_p8), 2147483647, %v256_v1  ;;  %v261_v9 = vsub.f32 (!%p252_p8), 0.0, %v256_v1  ;;  %vm276_vm0 = vcmp.ge.f32.partialorder (!%p252_p8), %v256_v1, 0.0 }
  0x5f   : > { %v258_v3 = vsub.f32 (!%p252_p8), 0.0, %v257_v2  ;;  %v262_v14 = vmax.f32 (!%p252_p8), %v261_v9, 0.0 }
  0x61   : > { %v259_v4 = vmul.f32 (!%p252_p8), 1.442695, %v258_v3 }
  0x63   : > { %609 = vpow2.f32 (!%p252_p8), %v259_v4 }
  0x64   : > { %v287_v23 = vld [vmem:[%s963_s30] sm:$0xff] (!%p508_p10) }
  0x6d   : > { %v610_v5 = vpop.eup %609 }
  0x6e   : > { %v263_v6 = vadd.f32 1.0, %v610_v5  ;;  %v266_v7 = vmul.f32 -0.5, %v610_v5  ;;  %v269_v10 = vand.u32 2147483647, %v610_v5  ;;  %v277_v12 = vsel %vm276_vm0, %v610_v5, 1.0 }
  0x70   : > { %611 = vlog2.f32 %v263_v6  ;;  %v267_v8 = vadd.f32 1.0, %v266_v7  ;;  %vm270_vm1 = vcmp.lt.f32.partialorder %v269_v10, 0.0004427343 }
  0x71   : > { %613 = vrcp.f32 %v263_v6 }
  0x72   : > { %v268_v11 = vmul.f32 %v610_v5, %v267_v8 }
  0x7a   : > { %v612_v13 = vpop.eup %611 }
  0x7b   : > { %v614_v15 = vpop.eup %613  ;;  %v265_v16 = vmul.f32 0.6931472, %v612_v13 }
  0x7c   : > { %v278_v17 = vmul.f32 %v614_v15, %v277_v12  ;;  %286 = sbr.rel (%p508_p10) target bundleno = 135 (0x87), region = 48 }
  0x7d   : > { %v271_v18 = vsel %vm270_vm1, %v268_v11, %v265_v16 }
  0x7e   : > { %v272_v19 = vadd.f32 %v271_v18, %v262_v14  ;;  %v279_v20 = vmul.f32 %v278_v17, %v278_v17 }
  0x80   : > { %v280_v21 = vmul.f32 0.2, %v279_v20 }
  0x82   : > { %v281_v22 = vmul.f32 %v280_v21, %v272_v19 }
  0x84   : > { %v289_v24 = vadd.f32 %v287_v23, %v281_v22 }
  0x86   : > { %290 = vst [vmem:[%s963_s30] sm:$0xff] %v289_v24 }
  0x87 PF: > { %p509_p4 = scmp.ne.s32.totalorder %s778_s14, 0 }
  0x88   : > { %v294_v25 = vlaneseq (!%p509_p4) }
  0x89   : > { %293 = sbr.rel (%p509_p4) target bundleno = 149 (0x95), region = 52 }
  0x8a   : > { %v295_v26 = vshrl.u32 (!%p509_p4), %v294_v25, 7  ;;  %v297_v27 = vand.u32 (!%p509_p4), 127, %v294_v25 }
  0x8c   : > { %v298_v28 = vmul.u32 (!%p509_p4), 128, %v295_v26 }
  0x8d   : > { %v302_v30 = vld [vmem:[%s963_s30] sm:$0xff] (!%p509_p4) }
  0x8e   : > { %v299_v29 = vadd.s32 (!%p509_p4), %v298_v28, %v297_v27 }
  0x90   : > { %vm300_vm2 = vcmp.lt.s32.totalorder %v299_v29, 130 }
  0x91   : > { %v301_v31 = vsel %vm300_vm2, %v281_v22, 0.0 }
  0x92   : > { %v304_v32 = vadd.f32 %v302_v30, %v301_v31 }
  0x94   : > { %305 = vst [vmem:[%s963_s30] sm:$0xff] %v304_v32 }
  0x95 PF: > { %p306_p9 = scmp.ge.s32.totalorder %s778_s14, 1  ;;  %p307_p11 = scmp.lt.s32.totalorder %s778_s14, 2 }
  0x97   : > { %p308_p2 = pnand %p307_p11, %p306_p9 }
  0x98   : > { %v312_v33 = vld [vmem:[#allocation5] sm:$0xff] (!%p308_p2)  ;;  %p510_p13 = scmp.eq.s32.totalorder (!%p308_p2), %s778_s14, 1 }
  0x99   : > { %311 = sbr.rel (%p308_p2) target bundleno = 211 (0xd3), region = 56  ;;  %v313_v34 = vsub.f32 (!%p308_p2), 0.0, %v312_v33 }
  0x9b   : > { %v314_v35 = vand.u32 (!%p308_p2), 2147483647, %v313_v34  ;;  %v318_v42 = vsub.f32 (!%p308_p2), 0.0, %v313_v34  ;;  %vm333_vm3 = vcmp.ge.f32.partialorder (!%p308_p2), %v313_v34, 0.0 }
  0x9d   : > { %v315_v36 = vsub.f32 (!%p308_p2), 0.0, %v314_v35  ;;  %v319_v47 = vmax.f32 (!%p308_p2), %v318_v42, 0.0 }
  0x9f   : > { %v316_v37 = vmul.f32 (!%p308_p2), 1.442695, %v315_v36 }
  0xa0   : > { %v344_v56 = vld [vmem:[%s963_s30] sm:$0xff] (!%p510_p13) }
  0xa1   : > { %615 = vpow2.f32 %v316_v37 }
  0xab   : > { %v616_v38 = vpop.eup %615 }
  0xac   : > { %v320_v39 = vadd.f32 1.0, %v616_v38  ;;  %v323_v40 = vmul.f32 -0.5, %v616_v38  ;;  %v326_v43 = vand.u32 2147483647, %v616_v38  ;;  %v334_v45 = vsel %vm333_vm3, %v616_v38, 1.0 }
  0xae   : > { %617 = vlog2.f32 %v320_v39  ;;  %v324_v41 = vadd.f32 1.0, %v323_v40  ;;  %vm327_vm4 = vcmp.lt.f32.partialorder %v326_v43, 0.0004427343 }
  0xaf   : > { %619 = vrcp.f32 %v320_v39 }
  0xb0   : > { %v325_v44 = vmul.f32 %v616_v38, %v324_v41 }
  0xb8   : > { %v618_v46 = vpop.eup %617 }
  0xb9   : > { %v620_v48 = vpop.eup %619  ;;  %v322_v49 = vmul.f32 0.6931472, %v618_v46 }
  0xba   : > { %v335_v50 = vmul.f32 %v620_v48, %v334_v45  ;;  %343 = sbr.rel (%p510_p13) target bundleno = 197 (0xc5), region = 60 }
  0xbb   : > { %v328_v51 = vsel %vm327_vm4, %v325_v44, %v322_v49 }
  0xbc   : > { %v329_v52 = vadd.f32 %v328_v51, %v319_v47  ;;  %v336_v53 = vmul.f32 %v335_v50, %v335_v50 }
  0xbe   : > { %v337_v54 = vmul.f32 0.2, %v336_v53 }
  0xc0   : > { %v338_v55 = vmul.f32 %v337_v54, %v329_v52 }
  0xc2   : > { %v346_v57 = vadd.f32 %v344_v56, %v338_v55 }
  0xc4   : > { %347 = vst [vmem:[%s963_s30] sm:$0xff] %v346_v57 }
  0xc5 PF: > { %p511_p5 = scmp.ne.s32.totalorder %s778_s14, 1 }
  0xc6   : > { %v351_v58 = vlaneseq (!%p511_p5) }
  0xc7   : > { %350 = sbr.rel (%p511_p5) target bundleno = 211 (0xd3), region = 64 }
  0xc8   : > { %v352_v59 = vshrl.u32 (!%p511_p5), %v351_v58, 7  ;;  %v354_v60 = vand.u32 (!%p511_p5), 127, %v351_v58 }
  0xca   : > { %v355_v61 = vmul.u32 (!%p511_p5), 128, %v352_v59 }
  0xcb   : > { %v359_v63 = vld [vmem:[%s963_s30] sm:$0xff] (!%p511_p5) }
  0xcc   : > { %v356_v62 = vadd.s32 (!%p511_p5), %v355_v61, %v354_v60 }
  0xce   : > { %vm357_vm5 = vcmp.lt.s32.totalorder %v356_v62, 250 }
  0xcf   : > { %v358_v0 = vsel %vm357_vm5, %v338_v55, 0.0 }
  0xd0   : > { %v361_v1 = vadd.f32 %v359_v63, %v358_v0 }
  0xd2   : > { %362 = vst [vmem:[%s963_s30] sm:$0xff] %v361_v1 }
  0xd3 PF: > { %s513_s21 = sshll.u32 %s778_s14, 7  ;;  %s377_s8 = sshll.u32 %s963_s30, 4  ;;  %s378_s8 = int_to_ptr.vmem [resolvable:$true] %s377_s8 }
  0xd4   : > { %s984_s7 = scalar_lea.hbm %s1036_s2, %s513_s21  ;;  %s364_s12 = scalar_lea.sflag [#allocation4], %s232_s24 }
  0xd5   : > { %s679_s17 = scalar_lea.vmem %s378_s8, 128  ;;  %p1060_p0 = scmp.ne.s32.totalorder %s1047_s26, 0 }
  0xd6   : > { %p680_p6 = scmp.ne.s32.totalorder %s378_s8, %s679_s17  ;;  %s791_s18 = smov [#allocation7]  }
  0xd7   : > { %s683_s20 = sshll.u32 %s791_s18, 4  ;;  %s684_s20 = int_to_ptr.vmem [resolvable:$false] %s683_s20 }
  0xd8   : > { %p681_p3 = pnand %p680_p6, %p1060_p0  ;;  %s685_s23 = scalar_lea.vmem %s684_s20, 256 }
  0xd9   : > { %p686_p12 = scmp.lt.s32.totalorder %s378_s8, %s684_s20  ;;  %p687_p7 = scmp.lt.s32.totalorder %s685_s23, %s679_s17 }
  0xda   : > { %p682_p1 = pneg %p681_p3 }
  0xdb   : > { %p688_p8 = por %p687_p7, %p686_p12 }
  0xdd   : > { %p689_p10 = pnand %p688_p8, %p682_p1 }
  0xdf   : > { %692 = shalt.err (!%p689_p10)
}
  0xe0   : > { %s693_s14 = scalar_lea.hbm %s984_s7, 128  ;;  %s697_s5 = scalar_lea.hbm %s1036_s2, 256 }
  0xe1   : > { %p694_p4 = scmp.ne.s32.totalorder %s984_s7, %s693_s14  ;;  %p698_p2 = scmp.lt.u32.totalorder %s984_s7, %s1036_s2 }
  0xe2   : > { %p699_p13 = scmp.lt.u32.totalorder %s697_s5, %s693_s14  ;;  %p701_p6 = scmp.lt.u32.totalorder %s693_s14, %s984_s7 }
  0xe3   : > { %p695_p9 = pnand %p694_p4, %p1060_p0 }
  0xe4   : > { %p700_p5 = por %p699_p13, %p698_p2 }
  0xe5   : > { %p696_p11 = pneg %p695_p9 }
  0xe6   : > { %p702_p3 = por %p701_p6, %p700_p5 }
  0xe8   : > { %p703_p1 = pnand %p702_p3, %p696_p11 }
  0xea   : > { %706 = shalt.err (!%p703_p1)
}
  0xeb   : > { %520 = dma.vmem_to_hbm [thread:$0]  (%p1060_p0), %s378_s8, 128, %s984_s7, %s364_s12  }
  0xec PF: > { %s389_s3 = sand.u32 1, %s758_s9   ;;  %p1061_p12 = scmp.ne.s32.totalorder %s1048_s27, 0 }
  0xed   : > { %p1062_p7 = scmp.ge.s32.totalorder %s786_s16, 2  ;;  %s390_s30 = scalar_lea.sflag [#allocation4], %s389_s3 }
  0xef   : > { %p530_p8 = pnand %p1062_p7, %p1061_p12 }
  0xf1   : > { %752 = dma.done.wait (!%p530_p8), %s390_s30, 128  }
  0xf2   : > { %754 = vsyncadd (!%p530_p8), %s390_s30, 4294967168  ;;  %s21_s16 = sadd.s32 1, %s786_s16   ;;  %s1063_s9 = smov %s762_s10 }
  0xf3   : > { %p18_p10 = scmp.ge.s32.totalorder %s21_s16, 4   ;;  %s1064_s10 = smov %s766_s11 }
  0xf4   : > { %s1065_s11 = smov %s873_s25  ;;  %s1066_s12 = smov %s774_s13 }
  0xf5   : > { %s1024_s13 = smov 0   ;;  %s1067_s14 = smov %s782_s15 }
  0xf6   : > { %s1068_s15 = smov %s1070_s19  ;;  %20 = sbr.rel (!%p18_p10) target bundleno = 9 (0x9), region = 114 }
  0xfd   :  { %395 = vsyncpa [#allocation3], 1 }
  0xfe   :  { %397 = vsyncpa [#allocation3 + $0x1], 1 }
  0xff   :  { %398 = vsyncpa [#allocation6], 1 }
 0x100   :  { %400 = vsyncpa [#allocation6 + $0x1], 1 }
 0x101   :  { %401 = vsyncpa [#allocation4], 1 }
 0x102   :  { %403 = vsyncpa [#allocation4 + $0x1], 1 }

</bundles_post_ra>
